<compile_context>
chip_gen: v5e
topology: v5e:2x2
jax: 0.10.0
libtpu: 0.0.40
codegen_flags: <defaults>
</compile_context>

<pallas_src>
import functools

import jax
import jax.numpy as jnp
from jax import lax
from jax.experimental import pallas as pl
from jax.experimental.pallas import tpu as pltpu


def _mfca_kernel(nt, compute_dtype, precision,
                 delta_ref, x_ref, xr_ref, out_ref, acc_ref, *opt_attn):
    # delta_ref : SMEM (1,) float32 (scalar-prefetch)
    # x_ref     : VMEM (Bt, C, tn)
    # xr_ref    : VMEM (Bt, C, tn)
    # out_ref   : VMEM (Bt, C, tn)
    # acc_ref   : VMEM (Bt, C, C) float32 (energy accumulator / f32 attention)
    # opt_attn  : optional VMEM (Bt, C, C) compute_dtype attention (bf16 path)
    attn_ref = opt_attn[0] if opt_attn else acc_ref
    j = pl.program_id(1)

    # ---- phase 1: energy = x_RGB @ x^T accumulated over N tiles (NT form:
    # both operands contract on their last/lane dim; no transpose). ----
    @pl.when(j < nt)
    def _accumulate():
        xr = xr_ref[...].astype(compute_dtype)
        xv = x_ref[...].astype(compute_dtype)
        e = lax.dot_general(
            xr, xv,
            dimension_numbers=(((2,), (2,)), ((0,), (0,))),
            preferred_element_type=jnp.float32,
            precision=precision)

        # Assign on the first step (no zero-init pass / no RMW), accumulate after.
        @pl.when(j == 0)
        def _assign():
            acc_ref[...] = e

        @pl.when(j > 0)
        def _acc():
            acc_ref[...] += e

    # ---- softmax(rowmin(e) - e) == softmax(rowmax(e) - e): the exp arguments
    # are bit-identical to the reference's stabilized softmax.  Exact
    # reciprocal (amortized over C columns), delta folded in once, single
    # downcast into the attention scratch for the bf16 path. ----
    @pl.when(j == nt)
    def _softmax():
        e = acc_ref[...]
        p = jnp.exp(jnp.min(e, axis=-1, keepdims=True) - e)
        scale = delta_ref[0] / jnp.sum(p, axis=-1, keepdims=True)
        attn_ref[...] = (p * scale).astype(attn_ref.dtype)

    # ---- phase 2: out_tile = attn @ x_tile + x_tile (delta already folded). ----
    @pl.when(j >= nt)
    def _apply():
        xv = x_ref[...]
        attn = attn_ref[...]
        o = lax.dot_general(
            attn, xv.astype(attn.dtype),
            dimension_numbers=(((2,), (1,)), ((0,), (0,))),
            preferred_element_type=jnp.float32,
            precision=precision)
        out_ref[...] = (o + xv.astype(jnp.float32)).astype(out_ref.dtype)


def _tpu_generation():
    """Best-effort TPU generation detection (None if unknown / not a TPU)."""
    try:
        kind = jax.devices()[0].device_kind.lower()
    except Exception:
        return None
    if "tpu" not in kind:
        return None
    for g in ("7", "6", "5", "4"):
        if g in kind:
            return int(g)
    return None


def _choose_tiles(B, C, N, itemsize, acc_bytes, budget, num_cores):
    """Pick (batch_tile, n_tile).  Maximize tn first (nt==1 -> x DMA'd once),
    then fuse batches; keep total pipelined VMEM within `budget`."""

    def total_bytes(bt, tn):
        # 2x double-buffered (x, x_rgb, out) blocks + resident attention scratch.
        return 2 * 3 * bt * C * tn * itemsize + bt * acc_bytes

    if total_bytes(1, N) <= budget:
        cands = [d for d in range(1, B + 1)
                 if B % d == 0 and total_bytes(d, N) <= budget]
        if num_cores > 1 and B >= num_cores:
            # v7x: keep the "parallel" batch axis splittable and balanced
            # across the two TensorCores.
            balanced = [d for d in cands if (B // d) % num_cores == 0]
            if balanced:
                return max(balanced), N
            multi = [d for d in cands if (B // d) >= num_cores]
            if multi:
                return max(multi), N
        return max(cands), N

    # Large C*N: tile the spatial axis with lane-aligned divisors of N so only
    # the (C, C) attention stays resident.
    best = None
    t = 128
    while t <= N:
        if N % t == 0 and total_bytes(1, t) <= budget:
            best = t
        t += 128
    if best is None:
        # TODO(synk): row-tile the C axis of the attention scratch for very
        # large C (scratch >= ~16 MiB, i.e. C >= ~2048 on v7x's 64 MiB VMEM).
        best = 128 if N % 128 == 0 else N
    return 1, best


def mfca_module(x, x_rgb, delta, *, compute_dtype=None,
                vmem_budget_bytes=None, num_cores=None):
    """MFCA forward.  x, x_rgb: (B, C, H, W);  delta: scalar parameter."""
    B, C, H, W = x.shape
    N = H * W
    x_flat = x.reshape(B, C, N)
    xr_flat = x_rgb.reshape(B, C, N)
    delta_arr = jnp.asarray(delta, jnp.float32).reshape(1)

    gen = _tpu_generation()
    if num_cores is None:
        num_cores = 2 if gen == 7 else 1           # only v7x has 2 TCs/chip
    if vmem_budget_bytes is None:
        if gen == 7:
            vmem_budget_bytes = 44 * 1024 * 1024   # 64 MiB/TC physical
        elif gen in (4, 5, 6):
            vmem_budget_bytes = 80 * 1024 * 1024   # 128 MiB physical
        else:
            vmem_budget_bytes = 48 * 1024 * 1024   # unknown: safe everywhere

    if compute_dtype is None:
        compute_dtype = (jnp.bfloat16
                         if (C >= 256 or x.dtype == jnp.bfloat16)
                         else jnp.float32)
    compute_dtype = jnp.dtype(compute_dtype)
    separate_attn = compute_dtype != jnp.dtype(jnp.float32)

    itemsize = jnp.dtype(x.dtype).itemsize
    acc_bytes = C * C * 4 + (C * C * compute_dtype.itemsize if separate_attn else 0)

    bt, tn = _choose_tiles(B, C, N, itemsize, acc_bytes,
                           vmem_budget_bytes, num_cores)
    nt = N // tn
    num_b = B // bt

    # vmem limit derived from the actual allocation (+ headroom), not hardcoded.
    needed = 2 * 3 * bt * C * tn * itemsize + bt * acc_bytes
    vmem_limit = int(min(112 * 1024 * 1024,
                         max(32 * 1024 * 1024, needed + 8 * 1024 * 1024)))

    # f32 path: HIGHEST precision so the energy matches an f32 reference even
    # when split over N tiles.  bf16 path: native MXU bf16 (default precision).
    precision = None if separate_attn else lax.Precision.HIGHEST

    kernel = functools.partial(_mfca_kernel, nt, compute_dtype, precision)

    scratch = [pltpu.VMEM((bt, C, C), jnp.float32)]
    if separate_attn:
        scratch.append(pltpu.VMEM((bt, C, C), compute_dtype))

    x_map = lambda b, j, d: (b, 0, j % nt)                    # same tile order both phases
    xr_map = lambda b, j, d: (b, 0, jnp.minimum(j, nt - 1))   # no refetch during phase 2
    out_map = lambda b, j, d: (b, 0, jnp.maximum(j - nt, 0))  # written only in phase 2

    out_flat = pl.pallas_call(
        kernel,
        out_shape=jax.ShapeDtypeStruct((B, C, N), x.dtype),
        grid_spec=pltpu.PrefetchScalarGridSpec(
            num_scalar_prefetch=1,
            grid=(num_b, 2 * nt),
            in_specs=[
                pl.BlockSpec((bt, C, tn), x_map),
                pl.BlockSpec((bt, C, tn), xr_map),
            ],
            out_specs=pl.BlockSpec((bt, C, tn), out_map),
            scratch_shapes=scratch,
        ),
        compiler_params=pltpu.CompilerParams(
            dimension_semantics=("parallel", "arbitrary"),
            vmem_limit_bytes=vmem_limit,
        ),
    )(delta_arr, x_flat, xr_flat)

    return out_flat.reshape(B, C, H, W)


def _mfca_reference(x, x_rgb, delta):
    """Pure-JAX reference of the PyTorch forward (f32, highest precision)."""
    B, C, H, W = x.shape
    N = H * W
    q = x_rgb.reshape(B, C, N)
    k = x.reshape(B, C, N).transpose(0, 2, 1)
    energy = jnp.einsum("bcn,bnk->bck", q, k, precision=lax.Precision.HIGHEST)
    e_new = jnp.max(energy, axis=-1, keepdims=True) - energy
    attn = jax.nn.softmax(e_new, axis=-1)
    v = x.reshape(B, C, N)
    out = jnp.einsum("bck,bkn->bcn", attn, v,
                     precision=lax.Precision.HIGHEST).reshape(B, C, H, W)
    return delta * out + x


def _check(out, ref, atol, rtol):
    assert out.shape == ref.shape
    assert jnp.allclose(out, ref, atol=atol, rtol=rtol), (
        float(jnp.max(jnp.abs(out - ref))))


if __name__ == "__main__":
    key = jax.random.PRNGKey(0)

    # --- test 1: main small shape (B=2, C=4, 16x16); nt=1, f32 path ---
    B, C, H, W = 2, 4, 16, 16
    k1, k2, k3, k4 = jax.random.split(key, 4)
    x = jax.random.normal(k1, (B, C, H, W), dtype=jnp.float32)
    x_rgb = jax.random.normal(k2, (B, C, H, W), dtype=jnp.float32)

    # nn.Parameter(torch.zeros(1)) -> delta initialized to 0.0: output == x exactly.
    out = jax.block_until_ready(mfca_module(x, x_rgb, jnp.float32(0.0)))
    _check(out, _mfca_reference(x, x_rgb, jnp.float32(0.0)), atol=1e-6, rtol=1e-6)

    out = jax.block_until_ready(mfca_module(x, x_rgb, jnp.float32(0.5)))
    _check(out, _mfca_reference(x, x_rgb, jnp.float32(0.5)), atol=2e-3, rtol=2e-3)

    # --- test 2: batched tile path (B=4 fused into one batch tile) ---
    xb = jax.random.normal(k3, (4, C, H, W), dtype=jnp.float32)
    xrb = jax.random.normal(k4, (4, C, H, W), dtype=jnp.float32)
    out = jax.block_until_ready(mfca_module(xb, xrb, jnp.float32(0.3)))
    _check(out, _mfca_reference(xb, xrb, jnp.float32(0.3)), atol=2e-3, rtol=2e-3)

    # --- test 3: two-phase N-tiled path, forced by a tiny VMEM budget
    # (N=1024 -> tn=512, nt=2, grid=(2, 4)) ---
    k5, k6 = jax.random.split(k1)
    xt = jax.random.normal(k5, (2, 4, 32, 32), dtype=jnp.float32)
    xrt = jax.random.normal(k6, (2, 4, 32, 32), dtype=jnp.float32)
    out = jax.block_until_ready(
        mfca_module(xt, xrt, jnp.float32(0.5), vmem_budget_bytes=64 * 1024))
    _check(out, _mfca_reference(xt, xrt, jnp.float32(0.5)), atol=2e-3, rtol=2e-3)

    # --- test 4: bf16 compute path (C=512 >= threshold) with the dedicated
    # bf16 attention scratch.  Inputs scaled so the channel-softmax is not
    # razor-peaked and bf16 energy error stays well inside tolerance. ---
    k7, k8 = jax.random.split(k2)
    xc = 0.05 * jax.random.normal(k7, (2, 512, 8, 8), dtype=jnp.float32)
    xrc = 0.05 * jax.random.normal(k8, (2, 512, 8, 8), dtype=jnp.float32)
    out = jax.block_until_ready(mfca_module(xc, xrc, jnp.float32(0.7)))
    _check(out, _mfca_reference(xc, xrc, jnp.float32(0.7)), atol=5e-3, rtol=1e-2)

    print("KERNEL_OK")
</pallas_src>

<mosaic_0001>
module attributes {stable_mosaic.version = 11 : i64} {
  func.func @_mfca_kernel(%arg0: i32, %arg1: i32, %arg2: memref<1xf32, #tpu.memory_space<smem>>, %arg3: memref<2x4x256xf32, #tpu.memory_space<vmem>>, %arg4: memref<2x4x256xf32, #tpu.memory_space<vmem>>, %arg5: memref<2x4x256xf32, #tpu.memory_space<vmem>>, %arg6: memref<2x4x4xf32, #tpu.memory_space<vmem>>) attributes {dimension_semantics = [#tpu.dimension_semantics<parallel>, #tpu.dimension_semantics<arbitrary>], iteration_bounds = array<i64: 1, 2>, scalar_prefetch = 1 : i64, scratch_operands = 1 : i64, tpu.core_type = #tpu.core_type<tc>, window_params = [{transform_indices = @transform_0, window_bounds = array<i64: 2, 4, 256>}, {transform_indices = @transform_1, window_bounds = array<i64: 2, 4, 256>}, {transform_indices = @transform_2, window_bounds = array<i64: 2, 4, 256>}]} {
    %c1_i32 = arith.constant 1 : i32
    %0 = arith.cmpi slt, %arg1, %c1_i32 : i32
    %1 = arith.extui %0 : i1 to i32
    %c0_i32 = arith.constant 0 : i32
    %2 = arith.cmpi ne, %1, %c0_i32 : i32
    scf.if %2 {
      %c0 = arith.constant 0 : index
      %c0_4 = arith.constant 0 : index
      %c0_5 = arith.constant 0 : index
      %9 = vector.load %arg4[%c0, %c0_4, %c0_5] : memref<2x4x256xf32, #tpu.memory_space<vmem>>, vector<2x4x256xf32>
      %c0_6 = arith.constant 0 : index
      %c0_7 = arith.constant 0 : index
      %c0_8 = arith.constant 0 : index
      %10 = vector.load %arg3[%c0_6, %c0_7, %c0_8] : memref<2x4x256xf32, #tpu.memory_space<vmem>>, vector<2x4x256xf32>
      %cst = arith.constant dense<0.000000e+00> : vector<2x4x4xf32>
      %11 = tpu.matmul %9, %10, %cst {dimension_numbers = #tpu.dot_dimension_numbers<[2], [2], [1], [1], [0, 0, 0, 1, 1, 1], [0], [0]>, precision = #tpu.contract_precision<fp32>} : vector<2x4x256xf32>, vector<2x4x256xf32>, vector<2x4x4xf32> -> vector<2x4x4xf32>
      %c0_i32_9 = arith.constant 0 : i32
      %12 = arith.cmpi eq, %arg1, %c0_i32_9 : i32
      %13 = arith.extui %12 : i1 to i32
      %c0_i32_10 = arith.constant 0 : i32
      %14 = arith.cmpi ne, %13, %c0_i32_10 : i32
      scf.if %14 {
        %c0_13 = arith.constant 0 : index
        %c0_14 = arith.constant 0 : index
        %c0_15 = arith.constant 0 : index
        %18 = vector.load %arg6[%c0_13, %c0_14, %c0_15] : memref<2x4x4xf32, #tpu.memory_space<vmem>>, vector<2x4x4xf32>
        tpu.vector_store %arg6[%c0_13, %c0_14, %c0_15], %11 {strides = array<i32>} : memref<2x4x4xf32, #tpu.memory_space<vmem>>, vector<2x4x4xf32>,
      } else {
      }
      %c0_i32_11 = arith.constant 0 : i32
      %15 = arith.cmpi sgt, %arg1, %c0_i32_11 : i32
      %16 = arith.extui %15 : i1 to i32
      %c0_i32_12 = arith.constant 0 : i32
      %17 = arith.cmpi ne, %16, %c0_i32_12 : i32
      scf.if %17 {
        %c0_13 = arith.constant 0 : index
        %c0_14 = arith.constant 0 : index
        %c0_15 = arith.constant 0 : index
        %18 = vector.load %arg6[%c0_13, %c0_14, %c0_15] : memref<2x4x4xf32, #tpu.memory_space<vmem>>, vector<2x4x4xf32>
        %19 = arith.addf %18, %11 : vector<2x4x4xf32>
        %c0_16 = arith.constant 0 : index
        %c0_17 = arith.constant 0 : index
        %c0_18 = arith.constant 0 : index
        %20 = vector.load %arg6[%c0_16, %c0_17, %c0_18] : memref<2x4x4xf32, #tpu.memory_space<vmem>>, vector<2x4x4xf32>
        tpu.vector_store %arg6[%c0_16, %c0_17, %c0_18], %19 {strides = array<i32>} : memref<2x4x4xf32, #tpu.memory_space<vmem>>, vector<2x4x4xf32>,
      } else {
      }
    } else {
    }
    %c1_i32_0 = arith.constant 1 : i32
    %3 = arith.cmpi eq, %arg1, %c1_i32_0 : i32
    %4 = arith.extui %3 : i1 to i32
    %c0_i32_1 = arith.constant 0 : i32
    %5 = arith.cmpi ne, %4, %c0_i32_1 : i32
    scf.if %5 {
      %c0 = arith.constant 0 : index
      %c0_4 = arith.constant 0 : index
      %c0_5 = arith.constant 0 : index
      %9 = vector.load %arg6[%c0, %c0_4, %c0_5] : memref<2x4x4xf32, #tpu.memory_space<vmem>>, vector<2x4x4xf32>
      %cst = arith.constant dense<0x7F800000> : vector<2x4xf32>
      %10 = vector.multi_reduction <minimumf>, %9, %cst [2] : vector<2x4x4xf32> to vector<2x4xf32>
      %11 = vector.shape_cast %10 : vector<2x4xf32> to vector<2x4x1xf32>
      %12 = vector.broadcast %11 : vector<2x4x1xf32> to vector<2x4x4xf32>
      %13 = arith.subf %12, %9 : vector<2x4x4xf32>
      %14 = math.exp %13 : vector<2x4x4xf32>
      %c0_6 = arith.constant 0 : index
      %15 = memref.load %arg2[%c0_6] : memref<1xf32, #tpu.memory_space<smem>>
      %cst_7 = arith.constant dense<0.000000e+00> : vector<2x4xf32>
      %16 = vector.multi_reduction <add>, %14, %cst_7 [2] : vector<2x4x4xf32> to vector<2x4xf32>
      %17 = vector.shape_cast %16 : vector<2x4xf32> to vector<2x4x1xf32>
      %18 = vector.broadcast %15 : f32 to vector<2x4x1xf32>
      %19 = arith.divf %18, %17 : vector<2x4x1xf32>
      %20 = vector.broadcast %19 : vector<2x4x1xf32> to vector<2x4x4xf32>
      %21 = arith.mulf %14, %20 : vector<2x4x4xf32>
      %c0_8 = arith.constant 0 : index
      %c0_9 = arith.constant 0 : index
      %c0_10 = arith.constant 0 : index
      %22 = vector.load %arg6[%c0_8, %c0_9, %c0_10] : memref<2x4x4xf32, #tpu.memory_space<vmem>>, vector<2x4x4xf32>
      tpu.vector_store %arg6[%c0_8, %c0_9, %c0_10], %21 {strides = array<i32>} : memref<2x4x4xf32, #tpu.memory_space<vmem>>, vector<2x4x4xf32>,
    } else {
    }
    %c1_i32_2 = arith.constant 1 : i32
    %6 = arith.cmpi sge, %arg1, %c1_i32_2 : i32
    %7 = arith.extui %6 : i1 to i32
    %c0_i32_3 = arith.constant 0 : i32
    %8 = arith.cmpi ne, %7, %c0_i32_3 : i32
    scf.if %8 {
      %c0 = arith.constant 0 : index
      %c0_4 = arith.constant 0 : index
      %c0_5 = arith.constant 0 : index
      %9 = vector.load %arg3[%c0, %c0_4, %c0_5] : memref<2x4x256xf32, #tpu.memory_space<vmem>>, vector<2x4x256xf32>
      %c0_6 = arith.constant 0 : index
      %c0_7 = arith.constant 0 : index
      %c0_8 = arith.constant 0 : index
      %10 = vector.load %arg6[%c0_6, %c0_7, %c0_8] : memref<2x4x4xf32, #tpu.memory_space<vmem>>, vector<2x4x4xf32>
      %cst = arith.constant dense<0.000000e+00> : vector<2x4x256xf32>
      %11 = tpu.matmul %10, %9, %cst {dimension_numbers = #tpu.dot_dimension_numbers<[2], [1], [1], [2], [0, 0, 0, 1, 1, 2], [0], [0]>, precision = #tpu.contract_precision<fp32>} : vector<2x4x4xf32>, vector<2x4x256xf32>, vector<2x4x256xf32> -> vector<2x4x256xf32>
      %12 = arith.addf %11, %9 : vector<2x4x256xf32>
      %c0_9 = arith.constant 0 : index
      %c0_10 = arith.constant 0 : index
      %c0_11 = arith.constant 0 : index
      %13 = vector.load %arg5[%c0_9, %c0_10, %c0_11] : memref<2x4x256xf32, #tpu.memory_space<vmem>>, vector<2x4x256xf32>
      tpu.vector_store %arg5[%c0_9, %c0_10, %c0_11], %12 {strides = array<i32>} : memref<2x4x256xf32, #tpu.memory_space<vmem>>, vector<2x4x256xf32>,
    } else {
    }
    return
  }
  func.func @transform_0(%arg0: i32, %arg1: i32, %arg2: memref<1xf32, #tpu.memory_space<smem>>) -> (i32, i32, i32) {
    %c1_i32 = arith.constant 1 : i32
    %c0_i32 = arith.constant 0 : i32
    %0 = arith.cmpi eq, %c1_i32, %c0_i32 : i32
    %c1_i32_0 = arith.constant 1 : i32
    %1 = arith.select %0, %c1_i32_0, %c1_i32 : i32
    %2 = arith.remsi %arg1, %1 : i32
    %c0_i32_1 = arith.constant 0 : i32
    %3 = arith.cmpi ne, %2, %c0_i32_1 : i32
    %c0_i32_2 = arith.constant 0 : i32
    %4 = arith.cmpi slt, %2, %c0_i32_2 : i32
    %c0_i32_3 = arith.constant 0 : i32
    %5 = arith.cmpi slt, %1, %c0_i32_3 : i32
    %6 = arith.xori %4, %5 : i1
    %7 = arith.andi %6, %3 : i1
    %8 = arith.addi %2, %1 : i32
    %9 = arith.select %7, %8, %2 : i32
    %c0_i32_4 = arith.constant 0 : i32
    %c0_i32_5 = arith.constant 0 : i32
    return %arg0, %c0_i32_4, %9 : i32, i32, i32
  }
  func.func @transform_1(%arg0: i32, %arg1: i32, %arg2: memref<1xf32, #tpu.memory_space<smem>>) -> (i32, i32, i32) {
    %c0_i32 = arith.constant 0 : i32
    %0 = arith.minsi %arg1, %c0_i32 : i32
    %c0_i32_0 = arith.constant 0 : i32
    %c0_i32_1 = arith.constant 0 : i32
    return %arg0, %c0_i32_0, %0 : i32, i32, i32
  }
  func.func @transform_2(%arg0: i32, %arg1: i32, %arg2: memref<1xf32, #tpu.memory_space<smem>>) -> (i32, i32, i32) {
    %c1_i32 = arith.constant 1 : i32
    %0 = arith.subi %arg1, %c1_i32 : i32
    %c0_i32 = arith.constant 0 : i32
    %1 = arith.maxsi %0, %c0_i32 : i32
    %c0_i32_0 = arith.constant 0 : i32
    %c0_i32_1 = arith.constant 0 : i32
    return %arg0, %c0_i32_0, %1 : i32, i32, i32
  }
}

</mosaic_0001>

<bundles_post_ra>
// kernel: tpu_custom_call.1
= control target key start
LH: loop header
LB: loop body
LE: loop exit
PB: predicated region body
PF: predicated region fallthrough
CT: control target
= control target key end

     0   :  { %s2221_s0 = inlined_call_operand.<no memory space> [shape: f32[1], index: 0, kind: input, shape index: {}]   ;;  %s2222_s1 = inlined_call_operand.hbm [shape: f32[2,4,256], index: 1, kind: input, shape index: {}]   ;;  %s2223_s2 = inlined_call_operand.hbm [shape: f32[2,4,256], index: 2, kind: input, shape index: {}]   ;;  %s2224_s3 = inlined_call_operand.hbm [shape: f32[2,4,256], index: 3, kind: output, shape index: {}]  }
   0x1   :  { %8 = sst [smem:[#allocation4]] %s2221_s0 }
   0x2   :  { %9 = vsyncpa [#allocation6], 0 }
   0x3   :  { %10 = vsyncpa [#allocation9], 0 }
   0x4   :  { %12 = vsyncpa [#allocation9 + $0x1], 0 }
   0x5   :  { %13 = vsyncpa [#allocation7], 0 }
   0x6   :  { %15 = vsyncpa [#allocation7 + $0x1], 0  ;;  %s2020_s14 = smov 0   ;;  %s2022_s15 = smov 0  }
   0x7   :  { %s2024_s16 = smov 0   ;;  %s2026_s17 = smov 0  }
   0x8   :  { %s2028_s18 = smov 0   ;;  %s2030_s19 = smov 0  }
   0x9   :  { %s2032_s20 = smov 0  }
   0xa LB: > { %s1689_s0 = sadd.s32 4294967295, %s1989_s20   ;;  %s1690_s21 = sadd.s32 4294967294, %s1989_s20   ;;  %s1989_s20 = sphi %s2032_s20, %s21_s20   ;;  %s1985_s19 = sphi %s2030_s19, %s2234_s19   ;;  %s1981_s18 = sphi %s2028_s18, %s2233_s18   ;;  %s1977_s17 = sphi %s2026_s17, %s2211_s17   ;;  %s1973_s16 = sphi %s2024_s16, %s2232_s16   ;;  %s1969_s15 = sphi %s2022_s15, %s2206_s15   ;;  %s1965_s14 = sphi %s2020_s14, %s2231_s14  }
   0xb   : > { %p85_p0 = scmp.ne.s32.totalorder %s1977_s17, %s1973_s16  ;;  %p2056_p1 = scmp.eq.s32.totalorder %s1689_s0, 0 }
   0xc   : > { %p1961_p2 = scmp.ne.s32.totalorder %s1969_s15, 0  ;;  %p117_p4 = scmp.eq.s32.totalorder %s1689_s0, 1 }
   0xd   : > { %p2063_p3 = por %p2056_p1, %p85_p0  ;;  %p122_p5 = scmp.ne.s32.totalorder %s1969_s15, %s1965_s14 }
   0xe   : > { %p123_p6 = scmp.eq.s32.totalorder %s1690_s21, 1  ;;  %p2069_p7 = por %p1961_p2, %p117_p4 }
   0xf   : > { %p1693_p8 = scmp.ge.s32.totalorder %s1989_s20, 1  ;;  %p130_p10 = scmp.lt.s32.totalorder %s1989_s20, 3 }
  0x10   : > { %p2074_p9 = por %p123_p6, %p122_p5  ;;  %s145_s28 = sshll.u32 %s2222_s1, 4  ;;  %s146_s28 = int_to_ptr.hbm [resolvable:$true] %s145_s28 }
  0x11   : > { %p2082_p11 = pnand %p1693_p8, %p130_p10  ;;  %s1991_s30 = smov [#allocation5]  }
  0x12   : > { %s147_s4 = sshll.u32 %s1991_s30, 4  ;;  %s1992_s5 = smov 128   ;;  %s148_s4 = int_to_ptr.vmem [resolvable:$true] %s147_s4 }
  0x13   : > { %p1724_p12 = pneg %p2082_p11  ;;  %s1993_s6 = smov 8  }
  0x14   : > { %s30_s7 = sadd.s32 1, %s1985_s19  ;;  %p1962_p4 = scmp.ne.s32.totalorder %s1977_s17, 0 }
  0x15   : > { %p1725_p13 = pnand %p1724_p12, %p2056_p1  ;;  %p31_p2 = scmp.ge.s32.totalorder %s30_s7, 2 }
  0x16   : > { %p80_p5 = scmp.eq.s32.totalorder %s1989_s20, 0  ;;  %p1737_p8 = scmp.lt.s32.totalorder %s1989_s20, 2 }
  0x17   : > { %1727 = dma.hbm_to_vmem [thread:$0]  (!%p1725_p13), %s146_s28, 256, %s148_s4, [#allocation6], %s1992_s5, %s1992_s5, %s1993_s6  }
  0x18   : > { %s2236_s7 = smov (%p31_p2, %s30_s7), 0  ;;  %p81_p6 = por %p1962_p4, %p80_p5 }
  0x19   : > { %s176_s10 = sshll.u32 %s2223_s2, 4  ;;  %s1994_s11 = smov [#allocation8]   ;;  %s177_s10 = int_to_ptr.hbm [resolvable:$true] %s176_s10 }
  0x1a   : > { %s178_s12 = sshll.u32 %s1994_s11, 4  ;;  %p1729_p10 = pnand %p1737_p8, %p81_p6  ;;  %s179_s12 = int_to_ptr.vmem [resolvable:$true] %s178_s12 }
  0x1b   : > { %s1855_s13 = sshra.s32 %s177_s10, 4  ;;  %s1862_s26 = scalar_lea.hbm %s2223_s2, 16  ;;  %s1856_s13 = int_to_ptr.hbm [resolvable:$true] %s1855_s13 }
  0x1c   : > { %s1857_s16 = scalar_lea.hbm %s1856_s13, 16  ;;  %p1859_p13 = pneg %p1729_p10 }
  0x1d   : > { %p1858_p12 = scmp.ne.s32.totalorder %s1856_s13, %s1857_s16  ;;  %p1864_p4 = scmp.lt.s32.totalorder %s1862_s26, %s1857_s16 }
  0x1f   : > { %p1860_p0 = pnand %p1859_p13, %p1858_p12 }
  0x21   : > { %p1861_p2 = pneg %p1860_p0 }
  0x23   : > { %p1866_p5 = pnand %p1864_p4, %p1861_p2 }
  0x25   : > { %1869 = shalt.err (!%p1866_p5)
}
  0x26   : > { %1731 = dma.hbm_to_vmem [thread:$0]  (!%p1729_p10), %s177_s10, 256, %s179_s12, [#allocation9], %s1992_s5, %s1992_s5, %s1993_s6  }
  0x27   : > { %190 = sbr.rel (%p2082_p11) target bundleno = 779 (0x30b), region = 28 }
  0x2c   : > { %1950 = dma.done.wait (%p2056_p1), [#allocation6], 256  }
  0x2d   : > { %1952 = vsyncadd (%p2056_p1), [#allocation6], 4294967040  ;;  %s197_s27 = sand.u32 1, %s1977_s17  }
  0x2e   : > { %s1701_s28 = sshll.u32 %s197_s27, 4  ;;  %s198_s30 = scalar_lea.sflag [#allocation9], %s197_s27 }
  0x2f   : > { %s201_s4 = scalar_lea.vmem [#allocation8], %s1701_s28 }
  0x30   : > { %1954 = dma.done.wait (%p2063_p3), %s198_s30, 256  }
  0x31   : > { %1956 = vsyncadd (%p2063_p3), %s198_s30, 4294967040  ;;  %s220_s29 = sand.u32 1, %s1969_s15   ;;  %p1703_p1 = scmp.ge.s32.totalorder %s1981_s18, 1 }
  0x32   : > { %s1702_s5 = sshll.u32 %s220_s29, 4  ;;  %p1704_p3 = scmp.ne.s32.totalorder (!%p1703_p1), %s1981_s18, 0 }
  0x33   : > { %s2123_s6 = scalar_lea.vmem [#allocation10], %s1702_s5  ;;  %236 = sbr.rel (%p1703_p1) target bundleno = 272 (0x110), region = 40 }
  0x38   : > { %v237_v0 = vld [vmem:[%s201_s4] sm:$0xff]  ;;  %v238_v8 = vld [vmem:[%s201_s4 + $0x8] sm:$0xff] }
  0x39   : > { %242 = vst [vmem:[#allocation1] ss:$2 sm:$0xff] %v237_v0  ;;  %v239_v1 = vld [vmem:[#allocation5] sm:$0xff]  ;;  %v240_v21 = vld [vmem:[#allocation5 + $0x8] sm:$0xff] }
  0x40   : > { %v243_v2 = vld.sshfl [vmem:[#allocation1] sm:$0xff pattern:$0x75316420]  ;;  %v244_v3 = vld.sshfl [vmem:[#allocation1 + $0x8] sm:$0xff pattern:$0x75316420] }
  0x41   : > { %248 = vst [vmem:[#allocation1] ss:$2 sm:$0xff] %v239_v1  ;;  %v270_v4 = vand.u32 4294901760, %v243_v2  ;;  %v2126_v6 = vand.u32 4294901760, %v244_v3 }
  0x43   : > { %v271_v5 = vsub.f32 %v243_v2, %v270_v4  ;;  %v2129_v12 = vsub.f32 %v244_v3, %v2126_v6 }
  0x45   : > { %v272_v7 = vand.u32 4294901760, %v271_v5  ;;  %v418_v18 = vand.u32 4294901760, %v2129_v12 }
  0x47   : > { %v273_v9 = vsub.f32 %v271_v5, %v272_v7  ;;  %v419_v26 = vsub.f32 %v2129_v12, %v418_v18 }
  0x48   : > { %v249_v10 = vld.sshfl [vmem:[#allocation1] sm:$0xff pattern:$0x75316420]  ;;  %v250_v11 = vld.sshfl [vmem:[#allocation1 + $0x8] sm:$0xff pattern:$0x75316420] }
  0x49   : > { %v268_v13 = vand.u32 4294901760, %v249_v10  ;;  %v414_v14 = vand.u32 4294901760, %v250_v11  ;;  %546 = vst [vmem:[#allocation1] ss:$2 sm:$0xff] %v238_v8  ;;  %v274_v15 = vand.u32 4294901760, %v273_v9  ;;  %v420_v30 = vand.u32 4294901760, %v419_v26 }
  0x4b   : > { %v295_v16 = vsub.f32 %v249_v10, %v268_v13  ;;  %269 = vmatpush.xpose.msra.mxu0 %v268_v13  ;;  %345 = vmatpush.xpose.msra.mxu3 %v268_v13  ;;  %v441_v17 = vsub.f32 %v250_v11, %v414_v14 }
  0x4d   : > { %322 = vmatpush.xpose.msra.mxu2 %v295_v16  ;;  %v296_v19 = vand.u32 4294901760, %v295_v16  ;;  %v442_v20 = vand.u32 4294901760, %v441_v17 }
  0x4e   : > { %275 = vmatmul.f32.vlgmr.msra.gmra.mxu0 %v274_v15  ;;  %349 = vmatmul.f32.vlgmr.msra.gmra.mxu3 %v272_v7 }
  0x4f   : > { %v297_v22 = vsub.f32 %v295_v16, %v296_v19  ;;  %371 = vmatpush.xpose.msrb.mxu0 %v296_v19  ;;  %v443_v23 = vsub.f32 %v441_v17, %v442_v20 }
  0x50   : > { %325 = vmatmul.f32.vlgmr.msra.gmra.mxu2 %v271_v5  ;;  %v547_v24 = vld.sshfl [vmem:[#allocation1] sm:$0xff pattern:$0x75316420]  ;;  %v548_v25 = vld.sshfl [vmem:[#allocation1 + $0x8] sm:$0xff pattern:$0x75316420] }
  0x51   : > { %415 = vmatpush.xpose.msrb.mxu2 %v414_v14  ;;  %552 = vst [vmem:[#allocation1] ss:$2 sm:$0xff] %v240_v21  ;;  %v298_v27 = vand.u32 4294901760, %v297_v22  ;;  %v444_v28 = vand.u32 4294901760, %v443_v23  ;;  %v574_v29 = vand.u32 4294901760, %v547_v24  ;;  %v720_v39 = vand.u32 4294901760, %v548_v25 }
  0x53   : > { %468 = vmatpush.xpose.msra.mxu0 %v441_v17  ;;  %299 = vmatpush.xpose.msra.mxu1 %v298_v27  ;;  %v575_v31 = vsub.f32 %v547_v24, %v574_v29  ;;  %v721_v45 = vsub.f32 %v548_v25, %v720_v39 }
  0x54   : > { %445 = vmatpush.xpose.msrb.mxu3 %v444_v28 }
  0x55   : > { %517 = vmatpush.xpose.msra.mxu2 %v442_v20  ;;  %v576_v36 = vand.u32 4294901760, %v575_v31  ;;  %v722_v49 = vand.u32 4294901760, %v721_v45 }
  0x56   : > { %301 = vmatmul.f32.vlgmr.msra.gmra.mxu1 %v270_v4  ;;  %373 = vmatmul.f32.vlgmr.msrb.gmra.mxu0 %v270_v4 }
  0x57   : > { %393 = vmatpush.xpose.msrb.mxu1 %v268_v13  ;;  %447 = vmatmul.f32.vlgmr.msrb.gmra.mxu3 %v2126_v6  ;;  %v577_v42 = vsub.f32 %v575_v31, %v576_v36  ;;  %v723_v50 = vsub.f32 %v721_v45, %v722_v49 }
  0x58   : > { %539 = vmatpush.xpose.msra.mxu3 %v414_v14  ;;  %421 = vmatmul.f32.vlgmr.msrb.gmra.mxu2 %v420_v30  ;;  %v553_v32 = vld.sshfl [vmem:[#allocation1] sm:$0xff pattern:$0x75316420]  ;;  %v554_v33 = vld.sshfl [vmem:[#allocation1 + $0x8] sm:$0xff pattern:$0x75316420] }
  0x59   : > { %v572_v34 = vand.u32 4294901760, %v553_v32  ;;  %v718_v35 = vand.u32 4294901760, %v554_v33  ;;  %v578_v48 = vand.u32 4294901760, %v577_v42  ;;  %v724_v51 = vand.u32 4294901760, %v723_v50 }
  0x5b   : > { %491 = vmatpush.xpose.msra.mxu1 %v414_v14  ;;  %v599_v37 = vsub.f32 %v553_v32, %v572_v34  ;;  %573 = vmatpush.xpose.msrb.mxu0 %v572_v34  ;;  %v745_v38 = vsub.f32 %v554_v33, %v718_v35 }
  0x5c   : > { %649 = vmatpush.xpose.msrb.mxu3 %v572_v34 }
  0x5d   : > { %626 = vmatpush.xpose.msrb.mxu2 %v599_v37  ;;  %v600_v40 = vand.u32 4294901760, %v599_v37  ;;  %v746_v41 = vand.u32 4294901760, %v745_v38 }
  0x5e   : > { %395 = vmatmul.f32.vlgmr.msrb.gmra.mxu1 %v270_v4  ;;  %471 = vmatmul.f32.vlgmr.msra.gmra.mxu0 %v2129_v12 }
  0x5f   : > { %541 = vmatmul.f32.vlgmr.msra.gmra.mxu3 %v2126_v6  ;;  %v601_v43 = vsub.f32 %v599_v37, %v600_v40  ;;  %675 = vmatpush.xpose.msra.mxu0 %v600_v40  ;;  %v747_v44 = vsub.f32 %v745_v38, %v746_v41 }
  0x60   : > { %519 = vmatmul.f32.vlgmr.msra.gmra.mxu2 %v2126_v6 }
  0x61   : > { %v602_v46 = vand.u32 4294901760, %v601_v43  ;;  %719 = vmatpush.xpose.msra.mxu2 %v718_v35  ;;  %v748_v47 = vand.u32 4294901760, %v747_v44 }
  0x63   : > { %603 = vmatpush.xpose.msrb.mxu1 %v602_v46  ;;  %749 = vmatpush.xpose.msra.mxu3 %v748_v47 }
  0x66   : > { %495 = vmatmul.f32.vlgmr.msra.gmra.mxu1 %v418_v18  ;;  %579 = vmatmul.f32.vlgmr.msrb.gmra.mxu0 %v578_v48 }
  0x67   : > { %653 = vmatmul.f32.vlgmr.msrb.gmra.mxu3 %v576_v36  ;;  %697 = vmatpush.xpose.msra.mxu1 %v572_v34 }
  0x68   : > { %629 = vmatmul.f32.vlgmr.msrb.gmra.mxu2 %v575_v31  ;;  %772 = vmatpush.xpose.msrb.mxu0 %v745_v38 }
  0x69   : > { %821 = vmatpush.xpose.msrb.mxu2 %v746_v41  ;;  %843 = vmatpush.xpose.msrb.mxu3 %v718_v35 }
  0x6e   : > { %605 = vmatmul.f32.vlgmr.msrb.gmra.mxu1 %v574_v29  ;;  %677 = vmatmul.f32.vlgmr.msra.gmra.mxu0 %v574_v29 }
  0x6f   : > { %751 = vmatmul.f32.vlgmr.msra.gmra.mxu3 %v720_v39  ;;  %795 = vmatpush.xpose.msrb.mxu1 %v718_v35 }
  0x70   : > { %725 = vmatmul.f32.vlgmr.msra.gmra.mxu2 %v724_v51 }
  0x76   : > { %699 = vmatmul.f32.vlgmr.msra.gmra.mxu1 %v574_v29  ;;  %775 = vmatmul.f32.vlgmr.msrb.gmra.mxu0 %v721_v45 }
  0x77   : > { %845 = vmatmul.f32.vlgmr.msrb.gmra.mxu3 %v720_v39 }
  0x78   : > { %823 = vmatmul.f32.vlgmr.msrb.gmra.mxu2 %v720_v39 }
  0x7e   : > { %799 = vmatmul.f32.vlgmr.msrb.gmra.mxu1 %v722_v49 }
  0xcb   : > { %v276_v52 = vpop.f32.mrf.mxu0 }
  0xd1   : > { %v350_v53 = vpop.f32.mrf.mxu3 }
  0xd3   : > { %v302_v54 = vpop.f32.mrf.mxu1  ;;  %v326_v55 = vpop.f32.mrf.mxu2 }
  0xd4   : > { %v303_v56 = vadd.f32 %v302_v54, %v276_v52  ;;  %v374_v57 = vpop.f32.mrf.mxu0 }
  0xd6   : > { %v327_v58 = vadd.f32 %v326_v55, %v303_v56 }
  0xd8   : > { %v351_v59 = vadd.f32 %v350_v53, %v327_v58 }
  0xda   : > { %v375_v60 = vadd.f32 %v374_v57, %v351_v59  ;;  %v448_v61 = vpop.f32.mrf.mxu3 }
  0xdb   : > { %v396_v62 = vpop.f32.mrf.mxu1  ;;  %v422_v63 = vpop.f32.mrf.mxu2 }
  0xdc   : > { %v397_v0 = vadd.f32 %v396_v62, %v375_v60  ;;  %v472_v1 = vpop.f32.mrf.mxu0 }
  0xde   : > { %v423_v2 = vadd.f32 %v422_v63, %v397_v0 }
  0xe0   : > { %v449_v3 = vadd.f32 %v448_v61, %v423_v2 }
  0xe2   : > { %v473_v4 = vadd.f32 %v472_v1, %v449_v3  ;;  %v542_v5 = vpop.f32.mrf.mxu3 }
  0xe3   : > { %v496_v6 = vpop.f32.mrf.mxu1  ;;  %v520_v7 = vpop.f32.mrf.mxu2 }
  0xe4   : > { %v497_v8 = vadd.f32 %v496_v6, %v473_v4  ;;  %v580_v9 = vpop.f32.mrf.mxu0 }
  0xe6   : > { %v521_v10 = vadd.f32 %v520_v7, %v497_v8 }
  0xe8   : > { %v543_v11 = vadd.f32 %v542_v5, %v521_v10 }
  0xea   : > { %v654_v12 = vpop.f32.mrf.mxu3 }
  0xeb   : > { %v606_v13 = vpop.f32.mrf.mxu1  ;;  %v630_v14 = vpop.f32.mrf.mxu2 }
  0xec   : > { %v607_v15 = vadd.f32 %v606_v13, %v580_v9  ;;  %v678_v16 = vpop.f32.mrf.mxu0 }
  0xee   : > { %v631_v17 = vadd.f32 %v630_v14, %v607_v15 }
  0xf0   : > { %v655_v18 = vadd.f32 %v654_v12, %v631_v17 }
  0xf2   : > { %v679_v19 = vadd.f32 %v678_v16, %v655_v18  ;;  %v752_v20 = vpop.f32.mrf.mxu3 }
  0xf3   : > { %v700_v21 = vpop.f32.mrf.mxu1  ;;  %v726_v22 = vpop.f32.mrf.mxu2 }
  0xf4   : > { %v701_v23 = vadd.f32 %v700_v21, %v679_v19  ;;  %v776_v25 = vpop.f32.mrf.mxu0 }
  0xf6   : > { %v727_v24 = vadd.f32 %v726_v22, %v701_v23 }
  0xf8   : > { %v753_v26 = vadd.f32 %v752_v20, %v727_v24 }
  0xfa   : > { %v777_v27 = vadd.f32 %v776_v25, %v753_v26  ;;  %v846_v31 = vpop.f32.mrf.mxu3 }
  0xfb   : > { %v800_v28 = vpop.f32.mrf.mxu1  ;;  %v824_v29 = vpop.f32.mrf.mxu2 }
  0xfc   : > { %v801_v30 = vadd.f32 %v800_v28, %v777_v27  ;;  %852 = sbr.rel (%p1704_p3) target bundleno = 260 (0x104), region = 44 }
  0xfe   : > { %v825_v32 = vadd.f32 %v824_v29, %v801_v30 }
 0x100   : > { %v847_v33 = vadd.f32 %v846_v31, %v825_v32 }
 0x101   : > { %vm853_vm0 = vcmask 27648  }
 0x102   : > { %854 = vst.msk [vmem:[#allocation2] sm:$0xf] %vm853_vm0, %v543_v11 }
 0x103   : > { %855 = vst.msk [vmem:[#allocation2 + $0x4] sm:$0xf] %vm853_vm0, %v847_v33 }
 0x104 PF: > { %p1705_p11 = scmp.le.s32.totalorder %s1981_s18, 0 }
 0x106   : > { %859 = sbr.rel (%p1705_p11) target bundleno = 272 (0x110), region = 48 }
 0x10b   : > { %v860_v34 = vld [vmem:[#allocation2] sm:$0xf]  ;;  %vm864_vm1 = vcmask 27648   ;;  %v861_v35 = vld [vmem:[#allocation2 + $0x4] sm:$0xf] }
 0x10c   : > { %v862_v36 = vadd.f32 %v860_v34, %v543_v11  ;;  %v863_v37 = vadd.f32 %v861_v35, %v847_v33 }
 0x10e   : > { %865 = vst.msk [vmem:[#allocation2] sm:$0xf] %vm864_vm1, %v862_v36 }
 0x10f   : > { %866 = vst.msk [vmem:[#allocation2 + $0x4] sm:$0xf] %vm864_vm1, %v863_v37 }
 0x110 PF: > { %p1706_p0 = scmp.ne.s32.totalorder %s1981_s18, 1 }
 0x111   : > { %s2144_s22 = sld [smem:[#allocation4]] (!%p1706_p0) }
 0x112   : > { %870 = sbr.rel (%p1706_p0) target bundleno = 555 (0x22b), region = 52 }
 0x117   : > { %v871_v38 = vld [vmem:[#allocation2] sm:$0xf]  ;;  %vm873_vm2 = vcmask 27648   ;;  %v872_v40 = vld [vmem:[#allocation2 + $0x4] sm:$0xf]  ;;  %v893_v63 = vstv %s2144_s22 }
 0x118   : > { %v874_v39 = vsel %vm873_vm2, %v871_v38, inf  ;;  %v877_v41 = vsel %vm873_vm2, %v872_v40, inf }
 0x119   : > { %875 = vmin.xlane.f32.xlu0 %v874_v39 }
 0x121   : > { %878 = vmin.xlane.f32.xlu0 %v877_v41 }
 0x18c   : > { %v876_v42 = vpop.xlane.xlu0 %875 }
 0x18d   : > { %v880_v43 = vsub.f32 %v876_v42, %v871_v38 }
 0x18f   : > { %v882_v44 = vmul.f32 1.442695, %v880_v43 }
 0x191   : > { %1817 = vpow2.f32 %v882_v44 }
 0x194   : > { %v879_v45 = vpop.xlane.xlu0 %878 }
 0x195   : > { %v881_v46 = vsub.f32 %v879_v45, %v872_v40 }
 0x197   : > { %v1818_v47 = vpop.eup %1817  ;;  %v884_v48 = vmul.f32 1.442695, %v881_v46 }
 0x198   : > { %v887_v49 = vsel %vm873_vm2, %v1818_v47, 0.0 }
 0x199   : > { %1819 = vpow2.f32 %v884_v48  ;;  %888 = vadd.xlane.f32.xlu1 %v887_v49 }
 0x19f   : > { %v1820_v50 = vpop.eup %1819 }
 0x1a0   : > { %v890_v51 = vsel %vm873_vm2, %v1820_v50, 0.0 }
 0x1a1   : > { %891 = vadd.xlane.f32.xlu1 %v890_v51 }
 0x20c   : > { %v889_v52 = vpop.xlane.xlu1 %888 }
 0x20d   : > { %1821 = vrcp.f32 %v889_v52  ;;  %v905_v57 = vand.u32 2147483648, %v889_v52  ;;  %v903_v59 = vand.u32 2147483647, %v889_v52  ;;  %vm899_vm4 = vweird.f32 %v889_v52 }
 0x20f   : > { %v906_v62 = vor.u32 1.1754944e-38, %v905_v57  ;;  %vm904_vm6 = vcmp.eq.f32.partialorder %v903_v59, 8.507059e+37 }
 0x213   : > { %v1822_v53 = vpop.eup %1821 }
 0x214   : > { %v895_v54 = vmul.f32 %v1822_v53, %v889_v52  ;;  %v892_v55 = vpop.xlane.xlu1 %891  ;;  %vm900_vm3 = vweird.f32 %v1822_v53 }
 0x215   : > { %1823 = vrcp.f32 %v892_v55  ;;  %vm901_vm5 = vmor %vm899_vm4, %vm900_vm3  ;;  %v920_v5 = vand.u32 2147483648, %v892_v55  ;;  %v918_v8 = vand.u32 2147483647, %v892_v55  ;;  %vm914_vm8 = vweird.f32 %v892_v55 }
 0x216   : > { %v896_v56 = vsub.f32 1.0, %v895_v54 }
 0x217   : > { %v921_v10 = vor.u32 1.1754944e-38, %v920_v5  ;;  %vm919_vm10 = vcmp.eq.f32.partialorder %v918_v8, 8.507059e+37 }
 0x218   : > { %v897_v58 = vmul.f32 %v1822_v53, %v896_v56 }
 0x21a   : > { %v898_v60 = vadd.f32 %v1822_v53, %v897_v58 }
 0x21b   : > { %v1824_v61 = vpop.eup %1823 }
 0x21c   : > { %v902_v0 = vsel %vm901_vm5, %v1822_v53, %v898_v60  ;;  %v910_v1 = vmul.f32 %v1824_v61, %v892_v55  ;;  %vm915_vm7 = vweird.f32 %v1824_v61 }
 0x21d   : > { %v907_v2 = vsel %vm904_vm6, %v906_v62, %v902_v0  ;;  %vm916_vm9 = vmor %vm914_vm8, %vm915_vm7 }
 0x21e   : > { %v908_v3 = vmul.f32 %v907_v2, %v893_v63  ;;  %v911_v4 = vsub.f32 1.0, %v910_v1 }
 0x220   : > { %v924_v6 = vmul.f32 %v1818_v47, %v908_v3  ;;  %v912_v7 = vmul.f32 %v1824_v61, %v911_v4 }
 0x222   : > { %926 = vst.msk [vmem:[#allocation2] sm:$0xf] %vm873_vm2, %v924_v6  ;;  %v913_v9 = vadd.f32 %v1824_v61, %v912_v7 }
 0x224   : > { %v917_v11 = vsel %vm916_vm9, %v1824_v61, %v913_v9 }
 0x225   : > { %v922_v12 = vsel %vm919_vm10, %v921_v10, %v917_v11 }
 0x226   : > { %v923_v13 = vmul.f32 %v922_v12, %v893_v63 }
 0x228   : > { %v925_v14 = vmul.f32 %v1820_v50, %v923_v13 }
 0x22a   : > { %927 = vst.msk [vmem:[#allocation2 + $0x4] sm:$0xf] %vm873_vm2, %v925_v14 }
 0x22b PF: > { %p1707_p6 = scmp.lt.s32.totalorder %s1981_s18, 1 }
 0x22d   : > { %931 = sbr.rel (%p1707_p6) target bundleno = 759 (0x2f7), region = 56 }
 0x232   : > { %v932_v15 = vld [vmem:[#allocation5] sm:$0xff]  ;;  %v934_v16 = vld [vmem:[#allocation2] sm:$0xf]  ;;  %vm945_vm11 = vcmask 31744   ;;  %vm949_vm12 = vcmask 1043456   ;;  %v933_v32 = vld [vmem:[#allocation5 + $0x8] sm:$0xff] }
 0x233   : > { %937 = vst [vmem:[#allocation1] ss:$2 sm:$0xff] %v932_v15  ;;  %v947_v17 = vsel %vm945_vm11, %v934_v16, 0  ;;  %v935_v29 = vld [vmem:[#allocation2 + $0x4] sm:$0xf] }
 0x234   : > { %v2151_v18 = vand.u32 4294901760, %v947_v17  ;;  %v1256_v35 = vsel %vm945_vm11, %v935_v29, 0 }
 0x235   : > { %v1279_v40 = vand.u32 4294901760, %v1256_v35 }
 0x236   : > { %v972_v19 = vsub.f32 %v947_v17, %v2151_v18 }
 0x237   : > { %v1280_v43 = vsub.f32 %v1256_v35, %v1279_v40 }
 0x238   : > { %v2154_v20 = vand.u32 4294901760, %v972_v19 }
 0x239   : > { %v1281_v48 = vand.u32 4294901760, %v1280_v43 }
 0x23a   : > { %v938_v21 = vld.sshfl [vmem:[#allocation1] sm:$0xff pattern:$0x75316420]  ;;  %v939_v22 = vld.sshfl [vmem:[#allocation1 + $0x8] sm:$0xff pattern:$0x75316420]  ;;  %v974_v23 = vsub.f32 %v972_v19, %v2154_v20 }
 0x23b   : > { %v950_v24 = vsel %vm949_vm12, %v938_v21, 0  ;;  %940 = vst [vmem:[#allocation1] ss:$2 sm:$0xff] %v932_v15  ;;  %v952_v25 = vsel %vm949_vm12, %v939_v22, 0  ;;  %v1282_v53 = vsub.f32 %v1280_v43, %v1281_v48 }
 0x23c   : > { %v969_v26 = vand.u32 4294901760, %v950_v24  ;;  %v1115_v27 = vand.u32 4294901760, %v952_v25  ;;  %v975_v28 = vand.u32 4294901760, %v974_v23 }
 0x23d   : > { %v1283_v58 = vand.u32 4294901760, %v1282_v53 }
 0x23e   : > { %v996_v30 = vsub.f32 %v950_v24, %v969_v26  ;;  %970 = vmatpush.msra.mxu0 %v969_v26  ;;  %1046 = vmatpush.msra.mxu3 %v969_v26  ;;  %v1142_v31 = vsub.f32 %v952_v25, %v1115_v27 }
 0x23f   : > { %976 = vmatmul.f32.vlgmr.msra.gmra.mxu0 %v975_v28  ;;  %1050 = vmatmul.f32.vlgmr.msra.gmra.mxu3 %v2154_v20 }
 0x240   : > { %1023 = vmatpush.msra.mxu2 %v996_v30  ;;  %v997_v33 = vand.u32 4294901760, %v996_v30  ;;  %v1143_v34 = vand.u32 4294901760, %v1142_v31 }
 0x241   : > { %1026 = vmatmul.f32.vlgmr.msra.gmra.mxu2 %v972_v19 }
 0x242   : > { %v2161_v36 = vld.sshfl [vmem:[#allocation1] sm:$0xff pattern:$0x75316420]  ;;  %v2163_v37 = vld.sshfl [vmem:[#allocation1 + $0x8] sm:$0xff pattern:$0x75316420]  ;;  %1116 = vmatpush.msrb.mxu2 %v1115_v27  ;;  %v998_v38 = vsub.f32 %v996_v30, %v997_v33  ;;  %1072 = vmatpush.msrb.mxu0 %v997_v33  ;;  %v1144_v39 = vsub.f32 %v1142_v31, %v1143_v34 }
 0x243   : > { %1247 = vst [vmem:[#allocation1] ss:$2 sm:$0xff] %v933_v32 }
 0x244   : > { %1218 = vmatpush.msra.mxu2 %v1143_v34  ;;  %1169 = vmatpush.msra.mxu0 %v1142_v31  ;;  %v999_v41 = vand.u32 4294901760, %v998_v38  ;;  %v1145_v42 = vand.u32 4294901760, %v1144_v39 }
 0x246   : > { %1000 = vmatpush.msra.mxu1 %v999_v41  ;;  %1146 = vmatpush.msrb.mxu3 %v1145_v42 }
 0x247   : > { %1002 = vmatmul.f32.vlgmr.msra.gmra.mxu1 %v2151_v18  ;;  %1074 = vmatmul.f32.vlgmr.msrb.gmra.mxu0 %v2151_v18 }
 0x248   : > { %1094 = vmatpush.msrb.mxu1 %v969_v26  ;;  %1148 = vmatmul.f32.vlgmr.msrb.gmra.mxu3 %v2151_v18 }
 0x249   : > { %1122 = vmatmul.f32.vlgmr.msrb.gmra.mxu2 %v975_v28  ;;  %1240 = vmatpush.msra.mxu3 %v1115_v27 }
 0x24a   : > { %1192 = vmatpush.msra.mxu1 %v1115_v27  ;;  %v1248_v44 = vld.sshfl [vmem:[#allocation1] sm:$0xff pattern:$0x75316420]  ;;  %v1249_v45 = vld.sshfl [vmem:[#allocation1 + $0x8] sm:$0xff pattern:$0x75316420] }
 0x24b   : > { %v1258_v46 = vsel %vm949_vm12, %v1248_v44, 0  ;;  %1250 = vst [vmem:[#allocation1] ss:$2 sm:$0xff] %v933_v32  ;;  %v1260_v47 = vsel %vm949_vm12, %v1249_v45, 0 }
 0x24c   : > { %v1277_v49 = vand.u32 4294901760, %v1258_v46  ;;  %v1423_v50 = vand.u32 4294901760, %v1260_v47 }
 0x24e   : > { %v1304_v51 = vsub.f32 %v1258_v46, %v1277_v49  ;;  %1278 = vmatpush.msrb.mxu0 %v1277_v49  ;;  %1354 = vmatpush.msrb.mxu3 %v1277_v49  ;;  %v1450_v52 = vsub.f32 %v1260_v47, %v1423_v50 }
 0x24f   : > { %1096 = vmatmul.f32.vlgmr.msrb.gmra.mxu1 %v2151_v18  ;;  %1172 = vmatmul.f32.vlgmr.msra.gmra.mxu0 %v972_v19 }
 0x250   : > { %1331 = vmatpush.msrb.mxu2 %v1304_v51  ;;  %1242 = vmatmul.f32.vlgmr.msra.gmra.mxu3 %v2151_v18  ;;  %v1305_v54 = vand.u32 4294901760, %v1304_v51  ;;  %v1451_v55 = vand.u32 4294901760, %v1450_v52 }
 0x251   : > { %1220 = vmatmul.f32.vlgmr.msra.gmra.mxu2 %v2151_v18 }
 0x252   : > { %v1306_v56 = vsub.f32 %v1304_v51, %v1305_v54  ;;  %1424 = vmatpush.msra.mxu2 %v1423_v50  ;;  %1380 = vmatpush.msra.mxu0 %v1305_v54  ;;  %v1452_v57 = vsub.f32 %v1450_v52, %v1451_v55  ;;  %v1251_v24 = vld.sshfl [vmem:[#allocation1] sm:$0xff pattern:$0x75316420]  ;;  %v1252_v30 = vld.sshfl [vmem:[#allocation1 + $0x8] sm:$0xff pattern:$0x75316420] }
 0x254   : > { %v1307_v59 = vand.u32 4294901760, %v1306_v56  ;;  %v1453_v60 = vand.u32 4294901760, %v1452_v57 }
 0x256   : > { %1308 = vmatpush.msrb.mxu1 %v1307_v59  ;;  %1454 = vmatpush.msra.mxu3 %v1453_v60 }
 0x257   : > { %1196 = vmatmul.f32.vlgmr.msra.gmra.mxu1 %v2154_v20  ;;  %1284 = vmatmul.f32.vlgmr.msrb.gmra.mxu0 %v1283_v58 }
 0x258   : > { %1358 = vmatmul.f32.vlgmr.msrb.gmra.mxu3 %v1281_v48  ;;  %1402 = vmatpush.msra.mxu1 %v1277_v49 }
 0x259   : > { %1334 = vmatmul.f32.vlgmr.msrb.gmra.mxu2 %v1280_v43  ;;  %1477 = vmatpush.msrb.mxu0 %v1450_v52 }
 0x25a   : > { %1526 = vmatpush.msrb.mxu2 %v1451_v55  ;;  %1548 = vmatpush.msrb.mxu3 %v1423_v50 }
 0x25f   : > { %1310 = vmatmul.f32.vlgmr.msrb.gmra.mxu1 %v1279_v40  ;;  %1382 = vmatmul.f32.vlgmr.msra.gmra.mxu0 %v1279_v40 }
 0x260   : > { %1456 = vmatmul.f32.vlgmr.msra.gmra.mxu3 %v1279_v40  ;;  %1500 = vmatpush.msrb.mxu1 %v1423_v50 }
 0x261   : > { %1430 = vmatmul.f32.vlgmr.msra.gmra.mxu2 %v1283_v58 }
 0x267   : > { %1404 = vmatmul.f32.vlgmr.msra.gmra.mxu1 %v1279_v40  ;;  %1480 = vmatmul.f32.vlgmr.msrb.gmra.mxu0 %v1280_v43 }
 0x268   : > { %1550 = vmatmul.f32.vlgmr.msrb.gmra.mxu3 %v1279_v40 }
 0x269   : > { %1528 = vmatmul.f32.vlgmr.msrb.gmra.mxu2 %v1279_v40 }
 0x26f   : > { %1504 = vmatmul.f32.vlgmr.msrb.gmra.mxu1 %v1281_v48 }
 0x2bc   : > { %v977_v61 = vpop.f32.mrf.mxu0 }
 0x2bd   : > { %v978_v2 = vadd.f32 %v977_v61, %v2161_v36 }
 0x2c2   : > { %v1051_v62 = vpop.f32.mrf.mxu3 }
 0x2c4   : > { %v1003_v63 = vpop.f32.mrf.mxu1  ;;  %v1027_v0 = vpop.f32.mrf.mxu2 }
 0x2c5   : > { %v1075_v1 = vpop.f32.mrf.mxu0  ;;  %v1004_v3 = vadd.f32 %v1003_v63, %v978_v2 }
 0x2c7   : > { %v1028_v9 = vadd.f32 %v1027_v0, %v1004_v3 }
 0x2c9   : > { %v1052_v12 = vadd.f32 %v1051_v62, %v1028_v9 }
 0x2cb   : > { %v1149_v4 = vpop.f32.mrf.mxu3  ;;  %v1076_v18 = vadd.f32 %v1075_v1, %v1052_v12 }
 0x2cc   : > { %v1097_v5 = vpop.f32.mrf.mxu1  ;;  %v1123_v6 = vpop.f32.mrf.mxu2 }
 0x2cd   : > { %v1124_v7 = vadd.f32 %v1123_v6, %v2163_v37  ;;  %v1173_v8 = vpop.f32.mrf.mxu0  ;;  %v1098_v21 = vadd.f32 %v1097_v5, %v1076_v18 }
 0x2cf   : > { %v1150_v10 = vadd.f32 %v1149_v4, %v1124_v7 }
 0x2d1   : > { %v1174_v11 = vadd.f32 %v1173_v8, %v1150_v10 }
 0x2d3   : > { %v1243_v13 = vpop.f32.mrf.mxu3 }
 0x2d4   : > { %v1197_v14 = vpop.f32.mrf.mxu1  ;;  %v1221_v15 = vpop.f32.mrf.mxu2 }
 0x2d5   : > { %v1198_v16 = vadd.f32 %v1197_v14, %v1174_v11  ;;  %v1285_v17 = vpop.f32.mrf.mxu0 }
 0x2d6   : > { %v1286_v29 = vadd.f32 %v1285_v17, %v1251_v24 }
 0x2d7   : > { %v1222_v19 = vadd.f32 %v1221_v15, %v1198_v16 }
 0x2d9   : > { %v1244_v20 = vadd.f32 %v1243_v13, %v1222_v19 }
 0x2db   : > { %v1558_v22 = vrot.slane %v1244_v20, 4  ;;  %v1359_v23 = vpop.f32.mrf.mxu3 }
 0x2dc   : > { %v1311_v25 = vpop.f32.mrf.mxu1  ;;  %v1335_v26 = vpop.f32.mrf.mxu2 }
 0x2dd   : > { %v1560_v27 = vsel %vm949_vm12, %v1098_v21, %v1558_v22  ;;  %v1383_v28 = vpop.f32.mrf.mxu0  ;;  %v1312_v31 = vadd.f32 %v1311_v25, %v1286_v29 }
 0x2de   : > { %1564 = vst [vmem:[%s2123_s6] sm:$0xff] %v1560_v27 }
 0x2df   : > { %v1336_v37 = vadd.f32 %v1335_v26, %v1312_v31 }
 0x2e1   : > { %v1360_v40 = vadd.f32 %v1359_v23, %v1336_v37 }
 0x2e3   : > { %v1457_v32 = vpop.f32.mrf.mxu3  ;;  %v1384_v45 = vadd.f32 %v1383_v28, %v1360_v40 }
 0x2e4   : > { %v1405_v33 = vpop.f32.mrf.mxu1  ;;  %v1431_v34 = vpop.f32.mrf.mxu2 }
 0x2e5   : > { %v1432_v35 = vadd.f32 %v1431_v34, %v1252_v30  ;;  %v1481_v36 = vpop.f32.mrf.mxu0  ;;  %v1406_v48 = vadd.f32 %v1405_v33, %v1384_v45 }
 0x2e7   : > { %v1458_v38 = vadd.f32 %v1457_v32, %v1432_v35 }
 0x2e9   : > { %v1482_v39 = vadd.f32 %v1481_v36, %v1458_v38 }
 0x2eb   : > { %v1551_v44 = vpop.f32.mrf.mxu3 }
 0x2ec   : > { %v1505_v41 = vpop.f32.mrf.mxu1  ;;  %v1529_v42 = vpop.f32.mrf.mxu2 }
 0x2ed   : > { %v1506_v43 = vadd.f32 %v1505_v41, %v1482_v39 }
 0x2ef   : > { %v1530_v46 = vadd.f32 %v1529_v42, %v1506_v43 }
 0x2f1   : > { %v1552_v47 = vadd.f32 %v1551_v44, %v1530_v46 }
 0x2f3   : > { %v1559_v49 = vrot.slane %v1552_v47, 4 }
 0x2f5   : > { %v1561_v50 = vsel %vm949_vm12, %v1406_v48, %v1559_v49 }
 0x2f6   : > { %1565 = vst [vmem:[%s2123_s6 + $0x8] sm:$0xff] %v1561_v50 }
 0x2f7 PF: > { %s1709_s23 = sadd.s32 4294967295, %s1981_s18  ;;  %s1585_s8 = sshll.u32 %s2123_s6, 4  ;;  %s1586_s8 = int_to_ptr.vmem [resolvable:$true] %s1585_s8 }
 0x2f8   : > { %p1575_p8 = scmp.gt.s32.totalorder %s1709_s23, 0  ;;  %s1567_s16 = scalar_lea.sflag [#allocation7], %s220_s29 }
 0x2f9   : > { %s1905_s27 = scalar_lea.hbm %s2224_s3, 16 }
 0x2fa   : > { %s2238_s23 = smov (!%p1575_p8, %s1709_s23), 0 }
 0x2fb   : > { %s1715_s9 = sshll.u32 %s2238_s23, 3 }
 0x2fc   : > { %s1584_s12 = scalar_lea.hbm %s2224_s3, %s1715_s9 }
 0x2fd   : > { %s1587_s13 = sshll.u32 %s1584_s12, 4  ;;  %s1588_s13 = int_to_ptr.hbm [resolvable:$true] %s1587_s13 }
 0x2fe   : > { %s1899_s0 = sshra.s32 %s1588_s13, 4  ;;  %s1900_s0 = int_to_ptr.hbm [resolvable:$true] %s1899_s0 }
 0x2ff   : > { %s1901_s21 = scalar_lea.hbm %s1900_s0, 16  ;;  %p1906_p2 = scmp.lt.s32.totalorder %s1900_s0, %s2224_s3 }
 0x300   : > { %p1902_p10 = scmp.ne.s32.totalorder %s1900_s0, %s1901_s21  ;;  %p1907_p4 = scmp.lt.s32.totalorder %s1905_s27, %s1901_s21 }
 0x302   : > { %p1903_p12 = pnand %p1902_p10, %p2069_p7  ;;  %p1908_p5 = por %p1907_p4, %p1906_p2 }
 0x304   : > { %p1904_p13 = pneg %p1903_p12 }
 0x306   : > { %p1909_p1 = pnand %p1908_p5, %p1904_p13 }
 0x308   : > { %1912 = shalt.err (!%p1909_p1)
}
 0x309   : > { %s1995_s4 = smov 128   ;;  %s1996_s29 = smov 8  }
 0x30a   : > { %1722 = dma.vmem_to_hbm [thread:$0]  (%p2069_p7), %s1586_s8, 256, %s1588_s13, %s1567_s16, %s1995_s4, %s1995_s4, %s1996_s29  }
 0x30b PF: > { %s1602_s5 = sand.u32 1, %s1965_s14   ;;  %p2230_p3 = scmp.ge.s32.totalorder %s1989_s20, 2 }
 0x30c   : > { %s1603_s6 = scalar_lea.sflag [#allocation7], %s1602_s5 }
 0x30d   : > { %p1733_p11 = pnand %p2230_p3, %p2074_p9 }
 0x30f   : > { %p1734_p0 = pneg %p1733_p11 }
 0x311   : > { %1958 = dma.done.wait (%p1734_p0), %s1603_s6, 256  }
 0x312   : > { %1960 = vsyncadd (%p1734_p0), %s1603_s6, 4294967040  ;;  %s21_s20 = sadd.s32 1, %s1989_s20   ;;  %s2231_s14 = smov %s1969_s15 }
 0x313   : > { %p18_p6 = scmp.ge.s32.totalorder %s21_s20, 4   ;;  %s2206_s15 = smov 0  }
 0x314   : > { %s2232_s16 = smov %s1977_s17  ;;  %s2211_s17 = smov 0  }
 0x315   : > { %s2233_s18 = smov %s1985_s19  ;;  %s2234_s19 = smov %s2236_s7 }
 0x316   :  { %20 = sbr.rel (!%p18_p6) target bundleno = 10 (0xa), region = 99 }
 0x31b   :  { %1609 = vsyncpa [#allocation6], 1 }
 0x31c   :  { %1611 = vsyncpa [#allocation6 + $0x1], 1 }
 0x31d   :  { %1612 = vsyncpa [#allocation9], 1 }
 0x31e   :  { %1614 = vsyncpa [#allocation9 + $0x1], 1 }
 0x31f   :  { %1615 = vsyncpa [#allocation7], 1 }
 0x320   :  { %1617 = vsyncpa [#allocation7 + $0x1], 1 }

</bundles_post_ra>
